<compile_context>
chip_gen: v7x
topology: tpu7x:2x2x1
jax: 0.10.0
libtpu: 0.0.40
codegen_flags: <defaults>
</compile_context>

<pallas_src>
from functools import partial

import jax
import jax.numpy as jnp
from jax import lax
from jax.experimental import pallas as pl
from jax.experimental.pallas import tpu as pltpu


def _attn_kernel(x_ref, wqkv_ref, wp_ref, bp_ref, o_ref, qkv_sc, *,
                 num_heads, head_dim, q_tile):
    qi = pl.program_id(1)
    D = num_heads * head_dim

    # ---- fused QKV projection for the whole sequence, once per batch elem ---
    @pl.when(qi == 0)
    def _():
        x = x_ref[0].astype(jnp.bfloat16)                  # (N, C)  bf16
        wqkv = wqkv_ref[...]                               # (C, 3D) bf16 (pre-scaled q cols)
        qkv = jnp.dot(x, wqkv, preferred_element_type=jnp.float32)  # (N, 3D) f32
        qkv_sc[...] = qkv.astype(jnp.bfloat16)

    q_start = pl.multiple_of(qi * q_tile, q_tile)
    qkv_q = qkv_sc[pl.ds(q_start, q_tile), :]              # (TQ, 3D) bf16
    qkv_full = qkv_sc[...]                                 # (N, 3D)  bf16

    q_all = qkv_q[:, 0 * D:1 * D]                          # (TQ, D)
    k_all = qkv_full[:, 1 * D:2 * D]                       # (N, D)
    v_all = qkv_full[:, 2 * D:3 * D]                       # (N, D)

    # Static unrolled loop over heads (small H; see TODO for large H).
    o_heads = []
    for h in range(num_heads):
        lo, hi = h * head_dim, (h + 1) * head_dim
        q = q_all[:, lo:hi]                                # (TQ, hd) bf16
        k = k_all[:, lo:hi]                                # (N, hd)  bf16
        v = v_all[:, lo:hi]                                # (N, hd)  bf16

        # scores: contract last dims directly (no explicit transpose of k).
        s = lax.dot_general(q, k, (((1,), (1,)), ((), ())),
                            preferred_element_type=jnp.float32)     # (TQ, N) f32
        s = s - jnp.max(s, axis=-1, keepdims=True)
        p = jnp.exp(s)
        denom = jnp.sum(p, axis=-1, keepdims=True)
        r = pl.reciprocal(denom, approx=True)
        r = r * (2.0 - denom * r)          # one Newton step -> near-exact recip
        p = (p * r).astype(jnp.bfloat16)
        # TODO(synk): attn_drop / proj_drop are p=0.0 (identity); no dropout.

        o_h = jnp.dot(p, v, preferred_element_type=jnp.float32)     # (TQ, hd) f32
        o_heads.append(o_h.astype(jnp.bfloat16))

    o_all = jnp.concatenate(o_heads, axis=-1)              # (TQ, D) bf16

    # Single fused output projection + one bias add (f32 accumulation).
    out = jnp.dot(o_all, wp_ref[...], preferred_element_type=jnp.float32)
    out = out + bp_ref[...].astype(jnp.float32)            # (TQ, C)
    o_ref[0] = out.astype(o_ref.dtype)


def _pick_q_tile(n):
    for t in (512, 256, 128):
        if n % t == 0:
            return t
    # TODO(synk): pad N to a multiple of 128 for large non-divisible seq lens.
    return n


def _pick_vmem_limit():
    cap = 128 * 1024 * 1024
    try:
        cap = getattr(pltpu.get_tpu_info(), "vmem_capacity_bytes", cap)
    except Exception:
        pass
    # ~12% headroom under physical (-> ~56 MiB on v7x), cap at 100 MiB (v5e/v6e).
    return int(min(cap - cap // 8, 100 * 1024 * 1024))


def attention_forward(x, w_qkv_t, w_proj_t, b_proj, *, num_heads, head_dim):
    """x: (B, N, C) f32; w_qkv_t: (C, 3*D) bf16 with q-scale folded in;
    w_proj_t: (D, C) bf16; b_proj: (1, C) f32."""
    B, N, C = x.shape
    D = num_heads * head_dim
    TQ = _pick_q_tile(N)
    nq = N // TQ

    return pl.pallas_call(
        partial(_attn_kernel, num_heads=num_heads, head_dim=head_dim,
                q_tile=TQ),
        out_shape=jax.ShapeDtypeStruct((B, N, C), x.dtype),
        grid_spec=pltpu.PrefetchScalarGridSpec(
            num_scalar_prefetch=0,
            grid=(B, nq),
            in_specs=[
                # x: full sequence, resident across the q-tile axis.
                pl.BlockSpec((1, N, C), lambda b, qi: (b, 0, 0)),
                # Weights / bias: constant index_map + single-buffered.
                pl.BlockSpec((C, 3 * D), lambda b, qi: (0, 0),
                             pipeline_mode=pl.Buffered(1)),
                pl.BlockSpec((D, C), lambda b, qi: (0, 0),
                             pipeline_mode=pl.Buffered(1)),
                pl.BlockSpec((1, C), lambda b, qi: (0, 0),
                             pipeline_mode=pl.Buffered(1)),
            ],
            out_specs=pl.BlockSpec((1, TQ, C), lambda b, qi: (b, qi, 0)),
            scratch_shapes=[pltpu.VMEM((N, 3 * D), jnp.bfloat16)],
        ),
        compiler_params=pltpu.CompilerParams(
            dimension_semantics=("parallel", "arbitrary"),
            vmem_limit_bytes=_pick_vmem_limit(),
        ),
    )(x, w_qkv_t, w_proj_t, b_proj)


def reference_attention(x, w_qkv_t, w_proj_t, b_proj, num_heads, scale):
    """Pure-JAX f32 replica of the PyTorch forward (for verification)."""
    B, N, C = x.shape
    qkv = x @ w_qkv_t                                     # (B, N, 3*D)
    D = qkv.shape[-1] // 3
    hd = D // num_heads
    qkv = qkv.reshape(B, N, 3, num_heads, hd).transpose(2, 0, 3, 1, 4)
    q, k, v = qkv[0] * scale, qkv[1], qkv[2]              # (B, H, N, hd)
    attn = jax.nn.softmax(q @ jnp.swapaxes(k, -2, -1), axis=-1)
    out = (attn @ v).transpose(0, 2, 1, 3).reshape(B, N, D)
    return out @ w_proj_t + b_proj


if __name__ == "__main__":
    # Small shapes consistent with the module: dim=32, num_heads=4 -> head_dim=8
    B, N, C = 2, 8, 32
    num_heads = 4
    head_dim = C // num_heads
    all_head_dim = head_dim * num_heads
    scale = head_dim ** (-0.5)
    D = all_head_dim

    key = jax.random.PRNGKey(0)
    kx, kqkv, kp, kb = jax.random.split(key, 4)

    x = jax.random.normal(kx, (B, N, C), dtype=jnp.float32)

    # torch-style parameter shapes: qkv.weight (3D, C) [qkv_bias=False],
    # proj.weight (C, D), proj.bias (C,)
    w_qkv = jax.random.normal(kqkv, (3 * D, C), dtype=jnp.float32) * 0.05
    w_proj = jax.random.normal(kp, (C, D), dtype=jnp.float32) * 0.05
    b_proj = jax.random.normal(kb, (C,), dtype=jnp.float32) * 0.05

    # One-time host-side parameter prep (constant transforms of the weights):
    #   transpose to (in, out); fold the q scale into Wqkv's q columns; cast
    #   matmul weights to bf16 (activations are cast inside the kernel).
    w_qkv_t = w_qkv.T                                     # (C, 3D), cols = (3, H, hd)
    w_qkv_scaled = jnp.concatenate(
        [w_qkv_t[:, :D] * scale, w_qkv_t[:, D:]], axis=1)
    w_qkv_bf = w_qkv_scaled.astype(jnp.bfloat16)          # (C, 3D) bf16
    w_proj_bf = w_proj.T.astype(jnp.bfloat16)             # (D, C)  bf16
    bp = b_proj.reshape(1, C)                             # (1, C)  f32

    out = attention_forward(x, w_qkv_bf, w_proj_bf, bp,
                            num_heads=num_heads, head_dim=head_dim)
    out = jax.block_until_ready(out)

    ref = reference_attention(x, w_qkv.T, w_proj.T, b_proj, num_heads, scale)
    # Tolerance reflects bf16 MXU operands (f32 accumulation, f32 softmax).
    assert jnp.allclose(out, ref, atol=2e-2, rtol=2e-2), "mismatch vs reference"

    print("KERNEL_OK")
</pallas_src>

<mosaic_0001>
module attributes {stable_mosaic.version = 11 : i64} {
  func.func @_attn_kernel(%arg0: i32, %arg1: i32, %arg2: memref<1x8x32xf32, #tpu.memory_space<vmem>>, %arg3: memref<32x96xbf16, #tpu.memory_space<vmem>>, %arg4: memref<32x32xbf16, #tpu.memory_space<vmem>>, %arg5: memref<1x32xf32, #tpu.memory_space<vmem>>, %arg6: memref<1x8x32xf32, #tpu.memory_space<vmem>>, %arg7: memref<8x96xbf16, #tpu.memory_space<vmem>>) attributes {dimension_semantics = [#tpu.dimension_semantics<parallel>, #tpu.dimension_semantics<arbitrary>], iteration_bounds = array<i64: 2, 1>, scalar_prefetch = 0 : i64, scratch_operands = 1 : i64, tpu.core_type = #tpu.core_type<tc>, window_params = [{transform_indices = @transform_0, window_bounds = array<i64: 1, 8, 32>}, {pipeline_mode = #tpu.pipeline_mode<synchronous>, transform_indices = @transform_1, window_bounds = array<i64: 32, 96>}, {pipeline_mode = #tpu.pipeline_mode<synchronous>, transform_indices = @transform_2, window_bounds = array<i64: 32, 32>}, {pipeline_mode = #tpu.pipeline_mode<synchronous>, transform_indices = @transform_3, window_bounds = array<i64: 1, 32>}, {transform_indices = @transform_4, window_bounds = array<i64: 1, 8, 32>}]} {
    %c0_i32 = arith.constant 0 : i32
    %0 = arith.cmpi eq, %arg1, %c0_i32 : i32
    %1 = arith.extui %0 : i1 to i32
    %c0_i32_0 = arith.constant 0 : i32
    %2 = arith.cmpi ne, %1, %c0_i32_0 : i32
    scf.if %2 {
      %c0_30 = arith.constant 0 : index
      %c0_31 = arith.constant 0 : index
      %c0_32 = arith.constant 0 : index
      %104 = vector.load %arg2[%c0_30, %c0_31, %c0_32] : memref<1x8x32xf32, #tpu.memory_space<vmem>>, vector<1x8x32xf32>
      %105 = vector.shape_cast %104 : vector<1x8x32xf32> to vector<8x32xf32>
      %106 = arith.truncf %105 : vector<8x32xf32> to vector<8x32xbf16>
      %c0_33 = arith.constant 0 : index
      %c0_34 = arith.constant 0 : index
      %107 = vector.load %arg3[%c0_33, %c0_34] : memref<32x96xbf16, #tpu.memory_space<vmem>>, vector<32x96xbf16>
      %cst_35 = arith.constant dense<0.000000e+00> : vector<8x96xf32>
      %108 = tpu.matmul %106, %107, %cst_35 {dimension_numbers = #tpu.dot_dimension_numbers<[1], [0], [0], [1], [0, 0, 1, 1], [], []>} : vector<8x32xbf16>, vector<32x96xbf16>, vector<8x96xf32> -> vector<8x96xf32>
      %109 = arith.truncf %108 : vector<8x96xf32> to vector<8x96xbf16>
      %c0_36 = arith.constant 0 : index
      %c0_37 = arith.constant 0 : index
      %110 = vector.load %arg7[%c0_36, %c0_37] : memref<8x96xbf16, #tpu.memory_space<vmem>>, vector<8x96xbf16>
      tpu.vector_store %arg7[%c0_36, %c0_37], %109 {strides = array<i32>} : memref<8x96xbf16, #tpu.memory_space<vmem>>, vector<8x96xbf16>,
    } else {
    }
    %c8_i32 = arith.constant 8 : i32
    %3 = arith.muli %arg1, %c8_i32 : i32
    %4 = tpu.assume_multiple %3, 8 : i32
    %5 = arith.index_cast %4 : i32 to index
    %c0 = arith.constant 0 : index
    %6 = vector.load %arg7[%5, %c0] : memref<8x96xbf16, #tpu.memory_space<vmem>>, vector<8x96xbf16>
    %c0_1 = arith.constant 0 : index
    %c0_2 = arith.constant 0 : index
    %7 = vector.load %arg7[%c0_1, %c0_2] : memref<8x96xbf16, #tpu.memory_space<vmem>>, vector<8x96xbf16>
    %8 = vector.extract_strided_slice %6 {offsets = [0, 0], sizes = [8, 32], strides = [1, 1]} : vector<8x96xbf16> to vector<8x32xbf16>
    %9 = vector.extract_strided_slice %7 {offsets = [0, 32], sizes = [8, 32], strides = [1, 1]} : vector<8x96xbf16> to vector<8x32xbf16>
    %10 = vector.extract_strided_slice %7 {offsets = [0, 64], sizes = [8, 32], strides = [1, 1]} : vector<8x96xbf16> to vector<8x32xbf16>
    %11 = vector.extract_strided_slice %8 {offsets = [0, 0], sizes = [8, 8], strides = [1, 1]} : vector<8x32xbf16> to vector<8x8xbf16>
    %12 = vector.extract_strided_slice %9 {offsets = [0, 0], sizes = [8, 8], strides = [1, 1]} : vector<8x32xbf16> to vector<8x8xbf16>
    %13 = vector.extract_strided_slice %10 {offsets = [0, 0], sizes = [8, 8], strides = [1, 1]} : vector<8x32xbf16> to vector<8x8xbf16>
    %cst = arith.constant dense<0.000000e+00> : vector<8x8xf32>
    %14 = tpu.matmul %11, %12, %cst {dimension_numbers = #tpu.dot_dimension_numbers<[1], [1], [0], [0], [0, 0, 1, 0], [], []>} : vector<8x8xbf16>, vector<8x8xbf16>, vector<8x8xf32> -> vector<8x8xf32>
    %cst_3 = arith.constant dense<0xFF800000> : vector<8xf32>
    %15 = vector.multi_reduction <maximumf>, %14, %cst_3 [1] : vector<8x8xf32> to vector<8xf32>
    %16 = vector.shape_cast %15 : vector<8xf32> to vector<8x1xf32>
    %17 = vector.broadcast %16 : vector<8x1xf32> to vector<8x8xf32>
    %18 = arith.subf %14, %17 : vector<8x8xf32>
    %19 = math.exp %18 : vector<8x8xf32>
    %cst_4 = arith.constant dense<0.000000e+00> : vector<8xf32>
    %20 = vector.multi_reduction <add>, %19, %cst_4 [1] : vector<8x8xf32> to vector<8xf32>
    %21 = vector.shape_cast %20 : vector<8xf32> to vector<8x1xf32>
    %22 = tpu.reciprocal %21 {approx = true} : vector<8x1xf32> -> vector<8x1xf32>
    %23 = arith.mulf %21, %22 : vector<8x1xf32>
    %cst_5 = arith.constant 2.000000e+00 : f32
    %24 = vector.broadcast %cst_5 : f32 to vector<8x1xf32>
    %25 = arith.subf %24, %23 : vector<8x1xf32>
    %26 = arith.mulf %22, %25 : vector<8x1xf32>
    %27 = vector.broadcast %26 : vector<8x1xf32> to vector<8x8xf32>
    %28 = arith.mulf %19, %27 : vector<8x8xf32>
    %29 = arith.truncf %28 : vector<8x8xf32> to vector<8x8xbf16>
    %cst_6 = arith.constant dense<0.000000e+00> : vector<8x8xf32>
    %30 = tpu.matmul %29, %13, %cst_6 {dimension_numbers = #tpu.dot_dimension_numbers<[1], [0], [0], [1], [0, 0, 1, 1], [], []>} : vector<8x8xbf16>, vector<8x8xbf16>, vector<8x8xf32> -> vector<8x8xf32>
    %31 = arith.truncf %30 : vector<8x8xf32> to vector<8x8xbf16>
    %32 = vector.extract_strided_slice %8 {offsets = [0, 8], sizes = [8, 8], strides = [1, 1]} : vector<8x32xbf16> to vector<8x8xbf16>
    %33 = vector.extract_strided_slice %9 {offsets = [0, 8], sizes = [8, 8], strides = [1, 1]} : vector<8x32xbf16> to vector<8x8xbf16>
    %34 = vector.extract_strided_slice %10 {offsets = [0, 8], sizes = [8, 8], strides = [1, 1]} : vector<8x32xbf16> to vector<8x8xbf16>
    %cst_7 = arith.constant dense<0.000000e+00> : vector<8x8xf32>
    %35 = tpu.matmul %32, %33, %cst_7 {dimension_numbers = #tpu.dot_dimension_numbers<[1], [1], [0], [0], [0, 0, 1, 0], [], []>} : vector<8x8xbf16>, vector<8x8xbf16>, vector<8x8xf32> -> vector<8x8xf32>
    %cst_8 = arith.constant dense<0xFF800000> : vector<8xf32>
    %36 = vector.multi_reduction <maximumf>, %35, %cst_8 [1] : vector<8x8xf32> to vector<8xf32>
    %37 = vector.shape_cast %36 : vector<8xf32> to vector<8x1xf32>
    %38 = vector.broadcast %37 : vector<8x1xf32> to vector<8x8xf32>
    %39 = arith.subf %35, %38 : vector<8x8xf32>
    %40 = math.exp %39 : vector<8x8xf32>
    %cst_9 = arith.constant dense<0.000000e+00> : vector<8xf32>
    %41 = vector.multi_reduction <add>, %40, %cst_9 [1] : vector<8x8xf32> to vector<8xf32>
    %42 = vector.shape_cast %41 : vector<8xf32> to vector<8x1xf32>
    %43 = tpu.reciprocal %42 {approx = true} : vector<8x1xf32> -> vector<8x1xf32>
    %44 = arith.mulf %42, %43 : vector<8x1xf32>
    %cst_10 = arith.constant 2.000000e+00 : f32
    %45 = vector.broadcast %cst_10 : f32 to vector<8x1xf32>
    %46 = arith.subf %45, %44 : vector<8x1xf32>
    %47 = arith.mulf %43, %46 : vector<8x1xf32>
    %48 = vector.broadcast %47 : vector<8x1xf32> to vector<8x8xf32>
    %49 = arith.mulf %40, %48 : vector<8x8xf32>
    %50 = arith.truncf %49 : vector<8x8xf32> to vector<8x8xbf16>
    %cst_11 = arith.constant dense<0.000000e+00> : vector<8x8xf32>
    %51 = tpu.matmul %50, %34, %cst_11 {dimension_numbers = #tpu.dot_dimension_numbers<[1], [0], [0], [1], [0, 0, 1, 1], [], []>} : vector<8x8xbf16>, vector<8x8xbf16>, vector<8x8xf32> -> vector<8x8xf32>
    %52 = arith.truncf %51 : vector<8x8xf32> to vector<8x8xbf16>
    %53 = vector.extract_strided_slice %8 {offsets = [0, 16], sizes = [8, 8], strides = [1, 1]} : vector<8x32xbf16> to vector<8x8xbf16>
    %54 = vector.extract_strided_slice %9 {offsets = [0, 16], sizes = [8, 8], strides = [1, 1]} : vector<8x32xbf16> to vector<8x8xbf16>
    %55 = vector.extract_strided_slice %10 {offsets = [0, 16], sizes = [8, 8], strides = [1, 1]} : vector<8x32xbf16> to vector<8x8xbf16>
    %cst_12 = arith.constant dense<0.000000e+00> : vector<8x8xf32>
    %56 = tpu.matmul %53, %54, %cst_12 {dimension_numbers = #tpu.dot_dimension_numbers<[1], [1], [0], [0], [0, 0, 1, 0], [], []>} : vector<8x8xbf16>, vector<8x8xbf16>, vector<8x8xf32> -> vector<8x8xf32>
    %cst_13 = arith.constant dense<0xFF800000> : vector<8xf32>
    %57 = vector.multi_reduction <maximumf>, %56, %cst_13 [1] : vector<8x8xf32> to vector<8xf32>
    %58 = vector.shape_cast %57 : vector<8xf32> to vector<8x1xf32>
    %59 = vector.broadcast %58 : vector<8x1xf32> to vector<8x8xf32>
    %60 = arith.subf %56, %59 : vector<8x8xf32>
    %61 = math.exp %60 : vector<8x8xf32>
    %cst_14 = arith.constant dense<0.000000e+00> : vector<8xf32>
    %62 = vector.multi_reduction <add>, %61, %cst_14 [1] : vector<8x8xf32> to vector<8xf32>
    %63 = vector.shape_cast %62 : vector<8xf32> to vector<8x1xf32>
    %64 = tpu.reciprocal %63 {approx = true} : vector<8x1xf32> -> vector<8x1xf32>
    %65 = arith.mulf %63, %64 : vector<8x1xf32>
    %cst_15 = arith.constant 2.000000e+00 : f32
    %66 = vector.broadcast %cst_15 : f32 to vector<8x1xf32>
    %67 = arith.subf %66, %65 : vector<8x1xf32>
    %68 = arith.mulf %64, %67 : vector<8x1xf32>
    %69 = vector.broadcast %68 : vector<8x1xf32> to vector<8x8xf32>
    %70 = arith.mulf %61, %69 : vector<8x8xf32>
    %71 = arith.truncf %70 : vector<8x8xf32> to vector<8x8xbf16>
    %cst_16 = arith.constant dense<0.000000e+00> : vector<8x8xf32>
    %72 = tpu.matmul %71, %55, %cst_16 {dimension_numbers = #tpu.dot_dimension_numbers<[1], [0], [0], [1], [0, 0, 1, 1], [], []>} : vector<8x8xbf16>, vector<8x8xbf16>, vector<8x8xf32> -> vector<8x8xf32>
    %73 = arith.truncf %72 : vector<8x8xf32> to vector<8x8xbf16>
    %74 = vector.extract_strided_slice %8 {offsets = [0, 24], sizes = [8, 8], strides = [1, 1]} : vector<8x32xbf16> to vector<8x8xbf16>
    %75 = vector.extract_strided_slice %9 {offsets = [0, 24], sizes = [8, 8], strides = [1, 1]} : vector<8x32xbf16> to vector<8x8xbf16>
    %76 = vector.extract_strided_slice %10 {offsets = [0, 24], sizes = [8, 8], strides = [1, 1]} : vector<8x32xbf16> to vector<8x8xbf16>
    %cst_17 = arith.constant dense<0.000000e+00> : vector<8x8xf32>
    %77 = tpu.matmul %74, %75, %cst_17 {dimension_numbers = #tpu.dot_dimension_numbers<[1], [1], [0], [0], [0, 0, 1, 0], [], []>} : vector<8x8xbf16>, vector<8x8xbf16>, vector<8x8xf32> -> vector<8x8xf32>
    %cst_18 = arith.constant dense<0xFF800000> : vector<8xf32>
    %78 = vector.multi_reduction <maximumf>, %77, %cst_18 [1] : vector<8x8xf32> to vector<8xf32>
    %79 = vector.shape_cast %78 : vector<8xf32> to vector<8x1xf32>
    %80 = vector.broadcast %79 : vector<8x1xf32> to vector<8x8xf32>
    %81 = arith.subf %77, %80 : vector<8x8xf32>
    %82 = math.exp %81 : vector<8x8xf32>
    %cst_19 = arith.constant dense<0.000000e+00> : vector<8xf32>
    %83 = vector.multi_reduction <add>, %82, %cst_19 [1] : vector<8x8xf32> to vector<8xf32>
    %84 = vector.shape_cast %83 : vector<8xf32> to vector<8x1xf32>
    %85 = tpu.reciprocal %84 {approx = true} : vector<8x1xf32> -> vector<8x1xf32>
    %86 = arith.mulf %84, %85 : vector<8x1xf32>
    %cst_20 = arith.constant 2.000000e+00 : f32
    %87 = vector.broadcast %cst_20 : f32 to vector<8x1xf32>
    %88 = arith.subf %87, %86 : vector<8x1xf32>
    %89 = arith.mulf %85, %88 : vector<8x1xf32>
    %90 = vector.broadcast %89 : vector<8x1xf32> to vector<8x8xf32>
    %91 = arith.mulf %82, %90 : vector<8x8xf32>
    %92 = arith.truncf %91 : vector<8x8xf32> to vector<8x8xbf16>
    %cst_21 = arith.constant dense<0.000000e+00> : vector<8x8xf32>
    %93 = tpu.matmul %92, %76, %cst_21 {dimension_numbers = #tpu.dot_dimension_numbers<[1], [0], [0], [1], [0, 0, 1, 1], [], []>} : vector<8x8xbf16>, vector<8x8xbf16>, vector<8x8xf32> -> vector<8x8xf32>
    %94 = arith.truncf %93 : vector<8x8xf32> to vector<8x8xbf16>
    %95 = tpu.concatenate %31, %52, %73, %94 in 1 : vector<8x8xbf16>, vector<8x8xbf16>, vector<8x8xbf16>, vector<8x8xbf16> -> vector<8x32xbf16>
    %c0_22 = arith.constant 0 : index
    %c0_23 = arith.constant 0 : index
    %96 = vector.load %arg4[%c0_22, %c0_23] : memref<32x32xbf16, #tpu.memory_space<vmem>>, vector<32x32xbf16>
    %cst_24 = arith.constant dense<0.000000e+00> : vector<8x32xf32>
    %97 = tpu.matmul %95, %96, %cst_24 {dimension_numbers = #tpu.dot_dimension_numbers<[1], [0], [0], [1], [0, 0, 1, 1], [], []>} : vector<8x32xbf16>, vector<32x32xbf16>, vector<8x32xf32> -> vector<8x32xf32>
    %c0_25 = arith.constant 0 : index
    %c0_26 = arith.constant 0 : index
    %98 = vector.load %arg5[%c0_25, %c0_26] : memref<1x32xf32, #tpu.memory_space<vmem>>, vector<1x32xf32>
    %99 = vector.broadcast %98 : vector<1x32xf32> to vector<8x32xf32>
    %100 = arith.addf %97, %99 : vector<8x32xf32>
    %c0_27 = arith.constant 0 : index
    %c0_28 = arith.constant 0 : index
    %c0_29 = arith.constant 0 : index
    %101 = vector.load %arg6[%c0_27, %c0_28, %c0_29] : memref<1x8x32xf32, #tpu.memory_space<vmem>>, vector<1x8x32xf32>
    %102 = vector.shape_cast %101 : vector<1x8x32xf32> to vector<8x32xf32>
    %103 = vector.shape_cast %100 : vector<8x32xf32> to vector<1x8x32xf32>
    tpu.vector_store %arg6[%c0_27, %c0_28, %c0_29], %103 {strides = array<i32>} : memref<1x8x32xf32, #tpu.memory_space<vmem>>, vector<1x8x32xf32>,
    return
  }
  func.func @transform_0(%arg0: i32, %arg1: i32) -> (i32, i32, i32) {
    %c0_i32 = arith.constant 0 : i32
    %c0_i32_0 = arith.constant 0 : i32
    %c0_i32_1 = arith.constant 0 : i32
    return %arg0, %c0_i32, %c0_i32_0 : i32, i32, i32
  }
  func.func @transform_1(%arg0: i32, %arg1: i32) -> (i32, i32) {
    %c0_i32 = arith.constant 0 : i32
    %c0_i32_0 = arith.constant 0 : i32
    %c0_i32_1 = arith.constant 0 : i32
    return %c0_i32, %c0_i32_0 : i32, i32
  }
  func.func @transform_2(%arg0: i32, %arg1: i32) -> (i32, i32) {
    %c0_i32 = arith.constant 0 : i32
    %c0_i32_0 = arith.constant 0 : i32
    %c0_i32_1 = arith.constant 0 : i32
    return %c0_i32, %c0_i32_0 : i32, i32
  }
  func.func @transform_3(%arg0: i32, %arg1: i32) -> (i32, i32) {
    %c0_i32 = arith.constant 0 : i32
    %c0_i32_0 = arith.constant 0 : i32
    %c0_i32_1 = arith.constant 0 : i32
    return %c0_i32, %c0_i32_0 : i32, i32
  }
  func.func @transform_4(%arg0: i32, %arg1: i32) -> (i32, i32, i32) {
    %c0_i32 = arith.constant 0 : i32
    %c0_i32_0 = arith.constant 0 : i32
    return %arg0, %arg1, %c0_i32 : i32, i32, i32
  }
}

</mosaic_0001>

<bundles_post_ra>
// kernel: tpu_custom_call.1
= control target key start
LH: loop header
LB: loop body
LE: loop exit
PB: predicated region body
PF: predicated region fallthrough
CT: control target
= control target key end

     0   :  { %9 = vsyncpa [#allocation4], 0  ;;  %s1876_s0 = inlined_call_operand.hbm [shape: f32[2,8,32], index: 0, kind: input, shape index: {}]   ;;  %s1877_s1 = inlined_call_operand.hbm [shape: bf16[32,96], index: 1, kind: input, shape index: {}]   ;;  %s1878_s2 = inlined_call_operand.hbm [shape: bf16[32,32], index: 2, kind: input, shape index: {}]   ;;  %s1879_s3 = inlined_call_operand.hbm [shape: f32[1,32], index: 3, kind: input, shape index: {}]   ;;  %s1880_s4 = inlined_call_operand.hbm [shape: f32[2,8,32], index: 4, kind: output, shape index: {}]  }
   0x1   :  { %11 = vsyncpa [#allocation4 + $0x1], 0 }
   0x2   :  { %12 = vsyncpa [#allocation7], 0 }
   0x3   :  { %13 = vsyncpa [#allocation10], 0 }
   0x4   :  { %14 = vsyncpa [#allocation5], 0 }
   0x5   :  { %16 = vsyncpa [#allocation5 + $0x1], 0  ;;  %s1527_s15 = smov 0   ;;  %s1529_s16 = smov 0  }
   0x6   :  { %s1531_s17 = smov 0   ;;  %s1533_s18 = smov 0  }
   0x7   :  { %s1535_s19 = smov 0   ;;  %s1537_s20 = smov 0  }
   0x8 LB: > { %s1018_s21 = sadd.s32 4294967295, %s1477_s20   ;;  %s1019_s22 = sadd.s32 4294967294, %s1477_s20   ;;  %s1477_s20 = sphi %s1537_s20, %s22_s20   ;;  %s1473_s19 = sphi %s1535_s19, %s1907_s19   ;;  %s1469_s18 = sphi %s1533_s18, %s1906_s18   ;;  %s1465_s17 = sphi %s1531_s17, %s1905_s17   ;;  %s1461_s16 = sphi %s1529_s16, %s1904_s16   ;;  %s1457_s15 = sphi %s1527_s15, %s1903_s15  }
   0x9   : > { %p54_p0 = scmp.ne.s32.totalorder %s1461_s16, %s1457_s15  ;;  %p1561_p1 = scmp.eq.s32.totalorder %s1018_s21, 0 }
   0xa   : > { %p1565_p2 = scmp.eq.s32.totalorder %s1018_s21, 1  ;;  %p149_p3 = scmp.eq.s32.totalorder %s1019_s22, 1 }
   0xb   : > { %s1886_s23 = scalar_select %p1561_p1, 1, 0 }
   0xc   : > { %s1887_s24 = scalar_select %p1565_p2, 1, 0 }
   0xd   : > { %p1571_p4 = por %p1561_p1, %p54_p0  ;;  %p1020_p5 = scmp.ge.s32.totalorder %s1477_s20, 1 }
   0xe   : > { %p1576_p6 = por %p149_p3, %p54_p0  ;;  %p156_p7 = scmp.lt.s32.totalorder %s1477_s20, 3 }
   0xf   : > { %s1888_s25 = scalar_select %p1571_p4, 1, 0 }
  0x10   : > { %s1889_s26 = scalar_select %p1576_p6, 1, 0 }
  0x11   : > { %p1581_p8 = pnand %p1020_p5, %p156_p7  ;;  %s1479_s28 = smov [#allocation6]  }
  0x12   : > { %1890 = sst [smem:[#allocation16_spill]] %s1889_s26  ;;  %s168_s29 = sshll.u32 %s1479_s28, 4  ;;  %s1585_s29 = int_to_ptr.vmem [resolvable:$true] %s168_s29 }
  0x13   : > { %s1891_s27 = scalar_select %p1581_p8, 1, 0 }
  0x14   : > { %p1156_p9 = pneg %p1581_p8  ;;  %s1480_s5 = smov [#allocation8]  }
  0x15   : > { %s181_s6 = sshll.u32 %s1480_s5, 4  ;;  %s1481_s7 = smov [#allocation9]   ;;  %s1596_s6 = int_to_ptr.vmem [resolvable:$true] %s181_s6 }
  0x16   : > { %p1592_p11 = pnand %p1156_p9, %p1561_p1  ;;  %s1598_s8 = sshll.u32 %s1481_s7, 4  ;;  %s196_s8 = int_to_ptr.vmem [resolvable:$true] %s1598_s8 }
  0x17   : > { %s1273_s11 = scalar_lea.hbm %s1877_s1, 256 }
  0x18   : > { %p1274_p12 = scmp.ne.s32.totalorder %s1877_s1, %s1273_s11  ;;  %p1608_p13 = pneg %p1592_p11 }
  0x19   : > { %p1280_p5 = scmp.lt.u32.totalorder %s1273_s11, %s1877_s1 }
  0x1a   : > { %p1276_p0 = pnand %p1608_p13, %p1274_p12 }
  0x1c   : > { %p1277_p3 = pneg %p1276_p0 }
  0x1e   : > { %p1282_p7 = pnand %p1280_p5, %p1277_p3 }
  0x20   : > { %1285 = shalt.err (!%p1282_p7)
}
  0x21   : > { %s1286_s28 = scalar_lea.vmem %s1585_s29, 256  ;;  %p1294_p1 = scmp.lt.s32.totalorder %s1585_s29, %s1585_s29 }
  0x22   : > { %p1287_p9 = scmp.ne.s32.totalorder %s1585_s29, %s1286_s28  ;;  %p1295_p4 = scmp.lt.s32.totalorder %s1286_s28, %s1286_s28 }
  0x24   : > { %p1289_p10 = pnand %p1287_p9, %p1608_p13  ;;  %p1296_p12 = por %p1295_p4, %p1294_p1 }
  0x26   : > { %p1290_p6 = pneg %p1289_p10 }
  0x28   : > { %p1297_p0 = pnand %p1296_p12, %p1290_p6 }
  0x2a   : > { %1300 = shalt.err (!%p1297_p0)
}
  0x2b   : > { %s1482_s5 = smov 64   ;;  %s1483_s7 = smov 4  }
  0x2c   : > { %1159 = dma.hbm_to_vmem [thread:$0]  (!%p1592_p11), %s1877_s1, 256, %s1585_s29, [#allocation7], %s1482_s5, %s1482_s5, %s1483_s7  }
  0x2d   : > { %s1301_s13 = scalar_lea.hbm %s1878_s2, 256 }
  0x2e   : > { %p1302_p1 = scmp.ne.s32.totalorder %s1878_s2, %s1301_s13  ;;  %p1308_p10 = scmp.lt.u32.totalorder %s1301_s13, %s1878_s2 }
  0x30   : > { %p1304_p4 = pnand %p1302_p1, %p1608_p13 }
  0x32   : > { %p1305_p6 = pneg %p1304_p4 }
  0x34   : > { %p1310_p3 = pnand %p1308_p10, %p1305_p6 }
  0x36   : > { %1313 = shalt.err (!%p1310_p3)
}
  0x37   : > { %s1314_s29 = scalar_lea.vmem %s1596_s6, 256  ;;  %p1322_p12 = scmp.lt.s32.totalorder %s1596_s6, %s1596_s6 }
  0x38   : > { %p1315_p5 = scmp.ne.s32.totalorder %s1596_s6, %s1314_s29  ;;  %p1323_p0 = scmp.lt.s32.totalorder %s1314_s29, %s1314_s29 }
  0x3a   : > { %p1317_p7 = pnand %p1315_p5, %p1608_p13  ;;  %p1324_p1 = por %p1323_p0, %p1322_p12 }
  0x3c   : > { %p1318_p9 = pneg %p1317_p7 }
  0x3e   : > { %p1325_p4 = pnand %p1324_p1, %p1318_p9 }
  0x40   : > { %1328 = shalt.err (!%p1325_p4)
}
  0x41   : > { %1162 = dma.hbm_to_vmem [thread:$0]  (!%p1592_p11), %s1878_s2, 256, %s1596_s6, [#allocation7], %s1482_s5, %s1482_s5, %s1483_s7  }
  0x42   : > { %s1329_s12 = scalar_lea.hbm %s1879_s3, 16 }
  0x43   : > { %p1330_p6 = scmp.ne.s32.totalorder %s1879_s3, %s1329_s12  ;;  %p1336_p5 = scmp.lt.u32.totalorder %s1329_s12, %s1879_s3 }
  0x45   : > { %p1332_p10 = pnand %p1330_p6, %p1608_p13 }
  0x47   : > { %p1333_p3 = pneg %p1332_p10 }
  0x49   : > { %p1338_p7 = pnand %p1336_p5, %p1333_p3 }
  0x4b   : > { %1341 = shalt.err (!%p1338_p7)
}
  0x4c   : > { %s1342_s29 = scalar_lea.vmem %s196_s8, 16  ;;  %s1349_s6 = scalar_lea.vmem %s196_s8, 32 }
  0x4d   : > { %p1343_p9 = scmp.ne.s32.totalorder %s196_s8, %s1342_s29  ;;  %p1350_p1 = scmp.lt.s32.totalorder %s196_s8, %s196_s8 }
  0x4e   : > { %p1351_p4 = scmp.lt.s32.totalorder %s1349_s6, %s1342_s29 }
  0x4f   : > { %p1345_p12 = pnand %p1343_p9, %p1608_p13 }
  0x50   : > { %p1352_p8 = por %p1351_p4, %p1350_p1 }
  0x51   : > { %p1346_p0 = pneg %p1345_p12 }
  0x53   : > { %p1353_p2 = pnand %p1352_p8, %p1346_p0 }
  0x55   : > { %1356 = shalt.err (!%p1353_p2)
}
  0x56   : > { %1165 = dma.hbm_to_vmem [thread:$0]  (!%p1592_p11), %s1879_s3, 16, %s196_s8, [#allocation10]  }
  0x57   : > { %s41_s14 = sadd.s32 1, %s1465_s17  ;;  %s34_s26 = sadd.s32 1, %s1473_s19 }
  0x58   : > { %p48_p2 = scmp.ne.s32.totalorder %s1465_s17, %s1461_s16  ;;  %p36_p8 = scmp.ge.s32.totalorder %s34_s26, 2 }
  0x59   : > { %p49_p13 = scmp.eq.s32.totalorder %s1477_s20, 0  ;;  %p1894_p6 = scmp.ne.s32.totalorder %s1887_s24, 0 }
  0x5a   : > { %p1177_p3 = scmp.lt.s32.totalorder %s1477_s20, 2  ;;  %s1909_s26 = smov (%p36_p8, %s34_s26), 0 }
  0x5b   : > { %p1678_p10 = por %p1894_p6, %p48_p2  ;;  %p50_p5 = por %p49_p13, %p48_p2 }
  0x5c   : > { %s206_s9 = sand.u32 1, %s1465_s17   ;;  %s38_s10 = ssub.s32 %s1473_s19, %s1909_s26 }
  0x5d   : > { %p39_p7 = scmp.eq.s32.totalorder %s38_s10, 0  ;;  %s1025_s8 = sshll.u32 %s206_s9, 3 }
  0x5e   : > { %s1026_s11 = sshll.u32 %s1473_s19, 7  ;;  %s210_s22 = scalar_lea.vmem [#allocation3], %s1025_s8 }
  0x5f   : > { %s1690_s12 = scalar_select %p39_p7, %s1465_s17, %s41_s14  }
  0x60   : > { %s1695_s24 = scalar_lea.hbm %s1876_s0, %s1026_s11  ;;  %s217_s28 = sshll.u32 %s210_s22, 4  ;;  %s1697_s28 = int_to_ptr.vmem [resolvable:$true] %s217_s28 }
  0x61   : > { %p1701_p11 = pnand %p1177_p3, %p50_p5  ;;  %s207_s6 = scalar_lea.sflag [#allocation4], %s206_s9 }
  0x62   : > { %s1357_s5 = scalar_lea.hbm %s1695_s24, 128  ;;  %s1362_s10 = scalar_lea.hbm %s1876_s0, 256 }
  0x63   : > { %p1358_p9 = scmp.ne.s32.totalorder %s1695_s24, %s1357_s5  ;;  %p1359_p12 = pneg %p1701_p11 }
  0x64   : > { %p1363_p4 = scmp.lt.u32.totalorder %s1695_s24, %s1876_s0  ;;  %p1364_p2 = scmp.lt.u32.totalorder %s1362_s10, %s1357_s5 }
  0x65   : > { %p1360_p0 = pnand %p1359_p12, %p1358_p9  ;;  %p1366_p13 = scmp.lt.u32.totalorder %s1357_s5, %s1695_s24 }
  0x66   : > { %p1365_p8 = por %p1364_p2, %p1363_p4 }
  0x67   : > { %p1361_p1 = pneg %p1360_p0 }
  0x68   : > { %p1367_p6 = por %p1366_p13, %p1365_p8 }
  0x6a   : > { %p1368_p3 = pnand %p1367_p6, %p1361_p1 }
  0x6c   : > { %1371 = shalt.err (!%p1368_p3)
}
  0x6d   : > { %s1372_s9 = scalar_lea.vmem %s1697_s28, 128  ;;  %s1484_s13 = smov [#allocation3]  }
  0x6e   : > { %p1373_p5 = scmp.ne.s32.totalorder %s1697_s28, %s1372_s9  ;;  %s1377_s21 = sshll.u32 %s1484_s13, 4  ;;  %s1378_s21 = int_to_ptr.vmem [resolvable:$false] %s1377_s21 }
  0x6f   : > { %s1379_s22 = scalar_lea.vmem %s1378_s21, 256  ;;  %p1380_p0 = scmp.lt.s32.totalorder %s1697_s28, %s1378_s21 }
  0x70   : > { %p1375_p7 = pnand %p1373_p5, %p1359_p12  ;;  %p1381_p4 = scmp.lt.s32.totalorder %s1379_s22, %s1372_s9 }
  0x72   : > { %p1376_p9 = pneg %p1375_p7  ;;  %p1382_p2 = por %p1381_p4, %p1380_p0 }
  0x74   : > { %p1383_p8 = pnand %p1382_p2, %p1376_p9 }
  0x76   : > { %1386 = shalt.err (!%p1383_p8)
}
  0x77   : > { %1169 = dma.hbm_to_vmem [thread:$0]  (!%p1701_p11), %s1695_s24, 128, %s1697_s28, %s207_s6  }
  0x78   : > { %p1897_p1 = scmp.ne.s32.totalorder %s1891_s27, 0 }
  0x79   : > { %s1733_s5 = sand.u32 (!%p1897_p1), 1, %s1461_s16   ;;  %p1898_p12 = scmp.ne.s32.totalorder (!%p1897_p1), %s1888_s25, 0 }
  0x7a   : > { %226 = sbr.rel (%p1897_p1) target bundleno = 1643 (0x66b), region = 36  ;;  %s1028_s7 = sshll.u32 (!%p1897_p1), %s1733_s5, 3 }
  0x7b   : > { %s229_s14 = scalar_lea.sflag (!%p1897_p1), [#allocation4], %s1733_s5  ;;  %s232_s10 = scalar_lea.vmem (!%p1897_p1), [#allocation3], %s1028_s7 }
  0x81   : > { %1440 = dma.done.wait (%p1898_p12), %s229_s14, 128  }
  0x82   : > { %1442 = vsyncadd (%p1898_p12), %s229_s14, 4294967168  ;;  %p1899_p11 = scmp.ne.s32.totalorder %s1886_s23, 0 }
  0x84   : > { %1444 = dma.done.wait (%p1899_p11), [#allocation7], 512  }
  0x85   : > { %1446 = vsyncadd (%p1899_p11), [#allocation7], 4294966784 }
  0x86   : > { %1448 = dma.done.wait (%p1899_p11), [#allocation10], 16  }
  0x87   : > { %1450 = vsyncadd (%p1899_p11), [#allocation10], 4294967280  ;;  %v1485_v0 = vmov 0.0   ;;  %vm1486_vm0 = vmmov 0   ;;  %v1251_v1 = vld [vmem:[#allocation6] sm:$0xff]   ;;  %v1252_v2 = vld [vmem:[#allocation6 + $0x8] sm:$0xff]  }
  0x88   : > { %1076 = vmatprep.subr.bf16.mxu0 %v1485_v0  ;;  %1080 = vmatprep.mubr.msk.bf16.mxu0 %vm1486_vm0, %v1485_v0  ;;  %v274_v3 = vld [vmem:[%s232_s10] sm:$0xff]  ;;  %vm292_vm1 = vcmask 261120   ;;  %vm337_vm2 = vcmask 781312   ;;  %s1487_s23 = smov 96   ;;  %s1488_s25 = smov 120   ;;  %vm351_vm3 = vcmask 64512  }
  0x89   : > { %1084 = vmatprep.subr.bf16.mxu1 %v1485_v0  ;;  %1086 = vmatprep.mubr.msk.bf16.mxu1 %vm1486_vm0, %v1485_v0  ;;  %v275_v4 = vpack.c.bf16 %v274_v3, %v274_v3  ;;  %s1489_s27 = smov 88   ;;  %s1490_s24 = smov 80   ;;  %vm418_vm4 = vcmask 1043456   ;;  %vm820_vm5 = vcmask 130048   ;;  %vm823_vm6 = vcmask 195584  }
  0x8a   : > { %1077 = vmatpush3.bf16.msra.mxu0 %v1251_v1  ;;  %s1491_s28 = smov 112   ;;  %s1492_s29 = smov 72  }
  0x8b   : > { %1078 = vmatprep.subr.bf16.mxu0 %v1485_v0  ;;  %s1493_s6 = smov 104   ;;  %s1494_s8 = smov 56  }
  0x8c   : > { %s1495_s11 = smov 64   ;;  %s1496_s9 = smov 40  }
  0x8d   : > { %s1497_s13 = smov 48   ;;  %s1498_s21 = smov 8  }
  0x8e   : > { %1079 = vmatpush3.bf16.msra.mxu0 %v1252_v2  ;;  %s1499_s22 = smov 16   ;;  %s1500_s14 = smov 24  }
  0x8f   : > { %1090 = vmatprep.subr.bf16.mxu0 %v1485_v0  ;;  %s1051_s10 = sshll.u32 %s1469_s18, 7  ;;  %s894_s18 = scalar_lea.sflag [#allocation5], %s1733_s5 }
  0x91   : > { %1081 = vmatmul.mubr.msk.bf16.vlgmr.msra.gmra.mrb[0].mxu0 %vm292_vm1, %v275_v4 }
  0x92   : > { %1092 = vmatprep.mubr.msk.bf16.mxu0 %vm1486_vm0, %v1485_v0 }
 0x164   : > { %v330_v5 = vpop.f32.mrb[0].mxu0 }
 0x165   : > { %v336_v6 = vpack.c.bf16 %v330_v5, %v330_v5  ;;  %v1082_v7 = vpop.f32.mrb[1].mxu0 }
 0x166   : > { %v333_v8 = vpop.f32.mrb[2].mxu0 }
 0x167   : > { %338 = vst.msk [vmem:[#allocation2] sm:$0xf] %vm337_vm2, %v336_v6  ;;  %v1083_v9 = vpop.f32.mrb[3].mxu0 }
 0x16e   : > { %v1762_v10 = vld [vmem:[#allocation2] ss:$0 sps:$4 sm:$0xff]  }
 0x16f   : > { %v344_v11 = vld [vmem:[#allocation2] sm:$0xf]  ;;  %349 = vrot.lane.b32.xlu0 %v1762_v10, %s1487_s23  ;;  %s268_s23 = scalar_lea.vmem [#allocation11], %s1028_s7 }
 0x170   : > { %v1039_v12 = vcombine.low %v344_v11, %v344_v11 }
 0x172   : > { %466 = vrot.lane.b32.xlu1 %v1039_v12, %s1488_s25  ;;  %s908_s25 = sshll.u32 %s268_s23, 4  ;;  %s1828_s25 = int_to_ptr.vmem [resolvable:$true] %s908_s25 }
 0x173   : > { %468 = vrot.lane.b32.xlu0 %v1762_v10, %s1489_s27  ;;  %s1387_s7 = scalar_lea.vmem %s1828_s25, 128 }
 0x174   : > { %p1388_p13 = scmp.ne.s32.totalorder %s1828_s25, %s1387_s7 }
 0x176   : > { %582 = vrot.lane.b32.xlu1 %v1762_v10, %s1490_s24  ;;  %p1389_p6 = pnand %p1388_p13, %p1678_p10 }
 0x177   : > { %580 = vrot.lane.b32.xlu0 %v1039_v12, %s1491_s28  ;;  %s1826_s28 = scalar_lea.hbm %s1880_s4, %s1051_s10 }
 0x178   : > { %p1390_p3 = pneg %p1389_p6 }
 0x17a   : > { %696 = vrot.lane.b32.xlu1 %v1762_v10, %s1492_s29  ;;  %s1501_s29 = smov [#allocation11]  }
 0x17b   : > { %694 = vrot.lane.b32.xlu0 %v1039_v12, %s1493_s6  ;;  %s1391_s6 = sshll.u32 %s1501_s29, 4  ;;  %s1392_s6 = int_to_ptr.vmem [resolvable:$false] %s1391_s6 }
 0x17c   : > { %p1394_p5 = scmp.lt.s32.totalorder %s1828_s25, %s1392_s6 }
 0x1e1   : > { %v350_v13 = vpop.permute.xlu0 %349 }
 0x1e2   : > { %v356_v14 = vsel %vm351_vm3, %v350_v13, 0 }
 0x1e3   : > { %1085 = vmatpush3.bf16.xpose.msra.mxu1 %v356_v14 }
 0x1e4   : > { %1096 = vmatprep.subr.bf16.mxu1 %v1485_v0  ;;  %v467_v16 = vpop.permute.xlu1 %466 }
 0x1e5   : > { %v469_v15 = vpop.permute.xlu0 %468 }
 0x1e6   : > { %v474_v17 = vsel %vm351_vm3, %v469_v15, 0 }
 0x1e8   : > { %v583_v18 = vpop.permute.xlu1 %582 }
 0x1e9   : > { %v588_v19 = vsel %vm351_vm3, %v583_v18, 0  ;;  %v581_v21 = vpop.permute.xlu0 %580 }
 0x1ea   : > { %1087 = vmatmul.mubr.msk.bf16.vlgmr.msra.gmra.mrb[0].mxu1 %vm351_vm3, %v344_v11 }
 0x1eb   : > { %1097 = vmatpush3.bf16.xpose.msra.mxu1 %v474_v17  ;;  %1098 = vmatprep.mubr.msk.bf16.mxu1 %vm1486_vm0, %v1485_v0 }
 0x1ec   : > { %1108 = vmatprep.subr.bf16.mxu1 %v1485_v0  ;;  %v697_v20 = vpop.permute.xlu1 %696 }
 0x1ed   : > { %v702_v22 = vsel %vm351_vm3, %v697_v20, 0  ;;  %v695_v23 = vpop.permute.xlu0 %694 }
 0x1f2   : > { %1099 = vmatmul.mubr.msk.bf16.vlgmr.msra.gmra.mrb[4].mxu1 %vm351_vm3, %v467_v16 }
 0x1f3   : > { %1109 = vmatpush3.bf16.xpose.msra.mxu1 %v588_v19  ;;  %1110 = vmatprep.mubr.msk.bf16.mxu1 %vm1486_vm0, %v1485_v0 }
 0x1f4   : > { %1120 = vmatprep.subr.bf16.mxu1 %v1485_v0 }
 0x1fa   : > { %1111 = vmatmul.mubr.msk.bf16.vlgmr.msra.gmra.mrb[8].mxu1 %vm351_vm3, %v581_v21 }
 0x1fb   : > { %1121 = vmatpush3.bf16.xpose.msra.mxu1 %v702_v22  ;;  %1122 = vmatprep.mubr.msk.bf16.mxu1 %vm1486_vm0, %v1485_v0 }
 0x1fc   : > { %1132 = vmatprep.subr.bf16.mxu1 %v1485_v0 }
 0x202   : > { %1123 = vmatmul.mubr.msk.bf16.vlgmr.msra.gmra.mrb[12].mxu1 %vm351_vm3, %v695_v23 }
 0x203   : > { %1136 = vmatprep.mubr.msk.bf16.mxu1 %vm1486_vm0, %v1485_v0 }
 0x2bd   : > { %v392_v24 = vpop.f32.mrb[0].mxu1 }
 0x2be   : > { %v1088_v25 = vpop.f32.mrb[1].mxu1  ;;  %v398_v26 = vsel %vm351_vm3, %v392_v24, -inf }
 0x2bf   : > { %399 = vmax.xlane.f32.xlu1 %v398_v26  ;;  %v395_v27 = vpop.f32.mrb[2].mxu1 }
 0x2c0   : > { %v1089_v28 = vpop.f32.mrb[3].mxu1 }
 0x2c5   : > { %v510_v29 = vpop.f32.mrb[4].mxu1 }
 0x2c6   : > { %v1100_v30 = vpop.f32.mrb[5].mxu1  ;;  %v516_v31 = vsel %vm351_vm3, %v510_v29, -inf }
 0x2c7   : > { %517 = vmax.xlane.f32.xlu0 %v516_v31  ;;  %v513_v32 = vpop.f32.mrb[6].mxu1 }
 0x2c8   : > { %v1101_v33 = vpop.f32.mrb[7].mxu1 }
 0x2cd   : > { %v624_v34 = vpop.f32.mrb[8].mxu1 }
 0x2ce   : > { %v1112_v35 = vpop.f32.mrb[9].mxu1  ;;  %v630_v36 = vsel %vm351_vm3, %v624_v34, -inf }
 0x2cf   : > { %631 = vmax.xlane.f32.xlu0 %v630_v36  ;;  %v627_v37 = vpop.f32.mrb[10].mxu1 }
 0x2d0   : > { %v1113_v38 = vpop.f32.mrb[11].mxu1 }
 0x2d5   : > { %v738_v39 = vpop.f32.mrb[12].mxu1 }
 0x2d6   : > { %v1124_v40 = vpop.f32.mrb[13].mxu1  ;;  %v744_v41 = vsel %vm351_vm3, %v738_v39, -inf }
 0x2d7   : > { %745 = vmax.xlane.f32.xlu1 %v744_v41  ;;  %v741_v42 = vpop.f32.mrb[14].mxu1 }
 0x2d8   : > { %v1125_v43 = vpop.f32.mrb[15].mxu1 }
 0x34c   : > { %v400_v44 = vpop.xlane.xlu1 %399 }
 0x34d   : > { %v401_v45 = vsub.f32 %v392_v24, %v400_v44 }
 0x34f   : > { %v402_v46 = vmul.f32 1.442695, %v401_v45 }
 0x351   : > { %1257 = vpow2.f32 %v402_v46  ;;  %v1255_v46 = vld [vmem:[#allocation8] sm:$0xff]  }
 0x352   : > { %1133 = vmatpush3.bf16.msra.mxu1 %v1255_v46 }
 0x353   : > { %1134 = vmatprep.subr.bf16.mxu1 %v1485_v0 }
 0x354   : > { %v518_v47 = vpop.xlane.xlu0 %517 }
 0x355   : > { %v519_v48 = vsub.f32 %v510_v29, %v518_v47  ;;  %v1256_v47 = vld [vmem:[#allocation8 + $0x8] sm:$0xff]  }
 0x356   : > { %1135 = vmatpush3.bf16.msra.mxu1 %v1256_v47 }
 0x357   : > { %v520_v49 = vmul.f32 1.442695, %v519_v48 }
 0x359   : > { %1259 = vpow2.f32 %v520_v49 }
 0x35b   : > { %v1258_v50 = vpop.eup %1257 }
 0x35c   : > { %v632_v51 = vpop.xlane.xlu0 %631  ;;  %v404_v52 = vsel %vm351_vm3, %v1258_v50, 0.0 }
 0x35d   : > { %v633_v53 = vsub.f32 %v624_v34, %v632_v51  ;;  %405 = vadd.xlane.f32.xlu0 %v404_v52 }
 0x35f   : > { %v634_v54 = vmul.f32 1.442695, %v633_v53 }
 0x361   : > { %1261 = vpow2.f32 %v634_v54 }
 0x363   : > { %v1260_v55 = vpop.eup %1259 }
 0x364   : > { %v522_v56 = vsel %vm351_vm3, %v1260_v55, 0.0  ;;  %v746_v59 = vpop.xlane.xlu1 %745 }
 0x365   : > { %523 = vadd.xlane.f32.xlu1 %v522_v56  ;;  %v747_v60 = vsub.f32 %v738_v39, %v746_v59 }
 0x367   : > { %v748_v61 = vmul.f32 1.442695, %v747_v60 }
 0x369   : > { %1263 = vpow2.f32 %v748_v61 }
 0x36b   : > { %v1262_v57 = vpop.eup %1261 }
 0x36c   : > { %v636_v58 = vsel %vm351_vm3, %v1262_v57, 0.0 }
 0x36d   : > { %637 = vadd.xlane.f32.xlu0 %v636_v58 }
 0x373   : > { %v1264_v62 = vpop.eup %1263 }
 0x374   : > { %v750_v63 = vsel %vm351_vm3, %v1264_v62, 0.0 }
 0x376   : > { %531 = vrot.lane.b32.xlu1 %v1762_v10, %s1494_s8  ;;  %s1393_s8 = scalar_lea.vmem %s1392_s6, 256 }
 0x377   : > { %p1395_p7 = scmp.lt.s32.totalorder %s1393_s8, %s1387_s7 }
 0x379   : > { %p1396_p9 = por %p1395_p7, %p1394_p5 }
 0x37b   : > { %p1397_p0 = pnand %p1396_p9, %p1390_p3 }
 0x383   : > { %413 = vrot.lane.b32.xlu0 %v1762_v10, %s1495_s11 }
 0x387   : > { %759 = vrot.lane.b32.xlu0 %v1762_v10, %s1496_s9 }
 0x39a   : > { %751 = vadd.xlane.f32.xlu1 %v750_v63 }
 0x3ab   : > { %645 = vrot.lane.b32.xlu1 %v1762_v10, %s1497_s13 }
 0x3ea   : > { %v406_v1 = vpop.xlane.xlu0 %405 }
 0x3eb   : > { %1265 = vrcp.f32 %v406_v1 }
 0x3f2   : > { %v524_v2 = vpop.xlane.xlu1 %523 }
 0x3f3   : > { %1267 = vrcp.f32 %v524_v2 }
 0x3f5   : > { %v1266_v3 = vpop.eup %1265 }
 0x3f6   : > { %v408_v4 = vmul.f32 %v1266_v3, %v406_v1  ;;  %v532_v15 = vpop.permute.xlu1 %531  ;;  %v1046_v1 = vld [vmem:[#allocation9] ss:$0 sm:$0xff] }
 0x3f7   : > { %v537_v17 = vsel %vm418_vm4, %v532_v15, 0 }
 0x3f8   : > { %v409_v5 = vsub.f32 2.0, %v408_v4 }
 0x3fa   : > { %v410_v6 = vmul.f32 %v1266_v3, %v409_v5  ;;  %v638_v7 = vpop.xlane.xlu0 %637 }
 0x3fb   : > { %1269 = vrcp.f32 %v638_v7 }
 0x3fc   : > { %v411_v9 = vmul.f32 %v1258_v50, %v410_v6 }
 0x3fd   : > { %v1268_v8 = vpop.eup %1267 }
 0x3fe   : > { %v526_v11 = vmul.f32 %v1268_v8, %v524_v2  ;;  %v414_v12 = vpop.permute.xlu0 %413  ;;  %v412_v10 = vpack.c.bf16 %v411_v9, %v411_v9 }
 0x3ff   : > { %v420_v13 = vsel %vm418_vm4, %v414_v12, 0 }
 0x400   : > { %v527_v14 = vsub.f32 2.0, %v526_v11  ;;  %1091 = vmatpush3.bf16.msra.mxu0 %v420_v13 }
 0x401   : > { %1102 = vmatprep.subr.bf16.mxu0 %v1485_v0 }
 0x402   : > { %v528_v16 = vmul.f32 %v1268_v8, %v527_v14  ;;  %v760_v28 = vpop.permute.xlu0 %759 }
 0x403   : > { %1093 = vmatmul.mubr.msk.bf16.vlgmr.msra.gmra.mrb[4].mxu0 %vm351_vm3, %v412_v10  ;;  %v765_v30 = vsel %vm418_vm4, %v760_v28, 0 }
 0x404   : > { %1103 = vmatpush3.bf16.msra.mxu0 %v537_v17  ;;  %1104 = vmatprep.mubr.msk.bf16.mxu0 %vm1486_vm0, %v1485_v0  ;;  %v529_v18 = vmul.f32 %v1260_v55, %v528_v16 }
 0x405   : > { %1114 = vmatprep.subr.bf16.mxu0 %v1485_v0  ;;  %v1270_v20 = vpop.eup %1269 }
 0x406   : > { %v530_v19 = vpack.c.bf16 %v529_v18, %v529_v18  ;;  %v640_v21 = vmul.f32 %v1270_v20, %v638_v7 }
 0x408   : > { %v641_v22 = vsub.f32 2.0, %v640_v21 }
 0x40a   : > { %v642_v23 = vmul.f32 %v1270_v20, %v641_v22 }
 0x40b   : > { %1105 = vmatmul.mubr.msk.bf16.vlgmr.msra.gmra.mrb[8].mxu0 %vm351_vm3, %v530_v19 }
 0x40c   : > { %1116 = vmatprep.mubr.msk.bf16.mxu0 %vm1486_vm0, %v1485_v0  ;;  %v643_v25 = vmul.f32 %v1262_v57, %v642_v23 }
 0x40e   : > { %v644_v29 = vpack.c.bf16 %v643_v25, %v643_v25 }
 0x427   : > { %v752_v24 = vpop.xlane.xlu1 %751 }
 0x428   : > { %1271 = vrcp.f32 %v752_v24 }
 0x42b   : > { %v646_v26 = vpop.permute.xlu1 %645 }
 0x42c   : > { %v651_v27 = vsel %vm418_vm4, %v646_v26, 0 }
 0x42d   : > { %1115 = vmatpush3.bf16.msra.mxu0 %v651_v27 }
 0x42e   : > { %1126 = vmatprep.subr.bf16.mxu0 %v1485_v0 }
 0x430   : > { %1117 = vmatmul.mubr.msk.bf16.vlgmr.msra.gmra.mrb[12].mxu0 %vm351_vm3, %v644_v29 }
 0x431   : > { %1127 = vmatpush3.bf16.msra.mxu0 %v765_v30  ;;  %1128 = vmatprep.mubr.msk.bf16.mxu0 %vm1486_vm0, %v1485_v0 }
 0x432   : > { %v1272_v31 = vpop.eup %1271 }
 0x433   : > { %v754_v32 = vmul.f32 %v1272_v31, %v752_v24 }
 0x435   : > { %v755_v33 = vsub.f32 2.0, %v754_v32 }
 0x437   : > { %v756_v34 = vmul.f32 %v1272_v31, %v755_v33 }
 0x439   : > { %v757_v35 = vmul.f32 %v1264_v62, %v756_v34 }
 0x43b   : > { %v758_v36 = vpack.c.bf16 %v757_v35, %v757_v35 }
 0x43d   : > { %1129 = vmatmul.mubr.msk.bf16.vlgmr.msra.gmra.mrb[16].mxu0 %vm351_vm3, %v758_v36 }
 0x4d6   : > { %v456_v37 = vpop.f32.mrb[4].mxu0 }
 0x4d7   : > { %v1094_v38 = vpop.f32.mrb[5].mxu0  ;;  %v462_v59 = vpack.c.bf16 %v456_v37, %v456_v37 }
 0x4d8   : > { %v459_v39 = vpop.f32.mrb[6].mxu0 }
 0x4d9   : > { %v1095_v40 = vpop.f32.mrb[7].mxu0 }
 0x4de   : > { %v573_v41 = vpop.f32.mrb[8].mxu0 }
 0x4df   : > { %v579_v42 = vpack.c.bf16 %v573_v41, %v573_v41  ;;  %v1106_v43 = vpop.f32.mrb[9].mxu0 }
 0x4e0   : > { %v576_v44 = vpop.f32.mrb[10].mxu0 }
 0x4e1   : > { %809 = vrot.lane.b32.xlu1 %v579_v42, %s1498_s21  ;;  %v1107_v45 = vpop.f32.mrb[11].mxu0 }
 0x503   : > { %v687_v48 = vpop.f32.mrb[12].mxu0 }
 0x504   : > { %v693_v49 = vpack.c.bf16 %v687_v48, %v687_v48  ;;  %v1118_v50 = vpop.f32.mrb[13].mxu0 }
 0x505   : > { %v690_v51 = vpop.f32.mrb[14].mxu0 }
 0x506   : > { %812 = vrot.lane.b32.xlu0 %v693_v49, %s1499_s22  ;;  %v1119_v52 = vpop.f32.mrb[15].mxu0 }
 0x510   : > { %v801_v53 = vpop.f32.mrb[16].mxu0 }
 0x511   : > { %v807_v54 = vpack.c.bf16 %v801_v53, %v801_v53  ;;  %v1130_v55 = vpop.f32.mrb[17].mxu0 }
 0x512   : > { %v804_v56 = vpop.f32.mrb[18].mxu0 }
 0x513   : > { %815 = vrot.lane.b32.xlu1 %v807_v54, %s1500_s14  ;;  %v1131_v57 = vpop.f32.mrb[19].mxu0 }
 0x553   : > { %v810_v58 = vpop.permute.xlu1 %809 }
 0x554   : > { %v819_v60 = vsel %vm351_vm3, %v462_v59, %v810_v58 }
 0x578   : > { %v813_v0 = vpop.permute.xlu0 %812 }
 0x579   : > { %v822_v61 = vsel %vm820_vm5, %v819_v60, %v813_v0 }
 0x585   : > { %v816_v62 = vpop.permute.xlu1 %815 }
 0x586   : > { %v825_v63 = vsel %vm823_vm6, %v822_v61, %v816_v62 }
 0x587   : > { %1137 = vmatmul.mubr.msk.bf16.vlgmr.msra.gmra.mrb[16].mxu1 %vm292_vm1, %v825_v63 }
 0x65a   : > { %v886_v2 = vpop.f32.mrb[16].mxu1 }
 0x65b   : > { %v887_v3 = vadd.f32 %v1046_v1, %v886_v2  ;;  %v1138_v4 = vpop.f32.mrb[17].mxu1 }
 0x65c   : > { %v889_v5 = vpop.f32.mrb[18].mxu1 }
 0x65d   : > { %v1139_v6 = vpop.f32.mrb[19].mxu1  ;;  %892 = vst.msk [vmem:[%s268_s23] sm:$0xff] %vm292_vm1, %v887_v3 }
 0x65e   : > { %1400 = shalt.err (!%p1397_p0)
}
 0x65f   : > { %s1401_s5 = scalar_lea.hbm %s1826_s28, 128  ;;  %s1405_s13 = scalar_lea.hbm %s1880_s4, 256 }
 0x660   : > { %p1402_p4 = scmp.ne.s32.totalorder %s1826_s28, %s1401_s5  ;;  %p1406_p1 = scmp.lt.u32.totalorder %s1826_s28, %s1880_s4 }
 0x661   : > { %p1407_p12 = scmp.lt.u32.totalorder %s1405_s13, %s1401_s5  ;;  %p1409_p13 = scmp.lt.u32.totalorder %s1401_s5, %s1826_s28 }
 0x662   : > { %p1403_p2 = pnand %p1402_p4, %p1678_p10 }
 0x663   : > { %p1408_p11 = por %p1407_p12, %p1406_p1 }
 0x664   : > { %p1404_p8 = pneg %p1403_p2 }
 0x665   : > { %p1410_p6 = por %p1409_p13, %p1408_p11 }
 0x667   : > { %p1411_p3 = pnand %p1410_p6, %p1404_p8 }
 0x669   : > { %1414 = shalt.err (!%p1411_p3)
}
 0x66a   : > { %1154 = dma.vmem_to_hbm [thread:$0]  (%p1678_p10), %s1828_s25, 128, %s1826_s28, %s894_s18  }
 0x66b PF: > { %s1900_s14 = sld [smem:[#allocation16_spill]]  ;;  %s920_s10 = sand.u32 1, %s1457_s15  }
 0x66c   : > { %p1902_p7 = scmp.ge.s32.totalorder %s1477_s20, 2  ;;  %s921_s23 = scalar_lea.sflag [#allocation5], %s920_s10 }
 0x671   : > { %p1901_p5 = scmp.ne.s32.totalorder %s1900_s14, 0 }
 0x673   : > { %p1171_p9 = pnand %p1902_p7, %p1901_p5 }
 0x675   : > { %1452 = dma.done.wait (!%p1171_p9), %s921_s23, 128  }
 0x676   : > { %1454 = vsyncadd (!%p1171_p9), %s921_s23, 4294967168  ;;  %s22_s20 = sadd.s32 1, %s1477_s20   ;;  %s1903_s15 = smov %s1461_s16 }
 0x677   : > { %p19_p0 = scmp.ge.s32.totalorder %s22_s20, 4   ;;  %s1904_s16 = smov %s1465_s17 }
 0x678   : > { %s1905_s17 = smov %s1690_s12  ;;  %s1906_s18 = smov %s1473_s19 }
 0x679   : > { %s1907_s19 = smov %s1909_s26  ;;  %21 = sbr.rel (!%p19_p0) target bundleno = 8 (0x8), region = 98 }
 0x680   :  { %926 = vsyncpa [#allocation4], 1 }
 0x681   :  { %928 = vsyncpa [#allocation4 + $0x1], 1 }
 0x682   :  { %929 = vsyncpa [#allocation7], 1 }
 0x683   :  { %930 = vsyncpa [#allocation10], 1 }
 0x684   :  { %931 = vsyncpa [#allocation5], 1 }
 0x685   :  { %933 = vsyncpa [#allocation5 + $0x1], 1 }

</bundles_post_ra>
